<compile_context>
chip_gen: v7x
topology: tpu7x:2x2x1
jax: 0.10.0
libtpu: 0.0.40
codegen_flags: <defaults>
</compile_context>

<pallas_src>
import jax
import jax.numpy as jnp
from jax.experimental import pallas as pl
from jax.experimental.pallas import tpu as pltpu

_LANE = 128
_NEG_BIG = -1e30  # acts as -inf for padded class columns without NaN risk


def _classification_kernel(x_ref, w1_ref, b1_ref, w2_ref, b2_ref, o_ref):
    # fc1 + ReLU (MXU matmul, f32 accumulation).  b1 is (1, H) and broadcasts.
    h = jnp.dot(x_ref[...], w1_ref[...], preferred_element_type=jnp.float32)
    h = jnp.maximum(h + b1_ref[...], 0.0)

    # fc2 (class dim padded to a lane-dense width; padded cols carry ~-inf bias).
    logits = jnp.dot(h.astype(w2_ref.dtype), w2_ref[...],
                     preferred_element_type=jnp.float32)
    logits = logits + b2_ref[...]  # b2 is (1, C_pad)

    # Numerically stable log_softmax over the class dim.  Padded lanes have
    # logits ~ -1e30 so they never win the max and exp() of them is 0.
    m = jnp.max(logits, axis=-1, keepdims=True)
    shifted = logits - m
    lse = jnp.log(jnp.sum(jnp.exp(shifted), axis=-1, keepdims=True))
    o_ref[...] = (shifted - lse).astype(o_ref.dtype)


def _round_up(n, m):
    return (n + m - 1) // m * m


def classification_forward(x, w1_t, b1, w2_t, b2, *,
                           block_b=256, compute_dtype=jnp.float32):
    """x: [B, E], w1_t: [E, H], b1: [1, H], w2_t: [H, C], b2: [1, C].

    Weights are pre-transposed to [in_features, out_features] so the kernel runs
    plain row-major matmuls on the MXU.  Returns [B, C] f32 log-probabilities.
    """
    B, E = x.shape
    H = w1_t.shape[1]
    C = w2_t.shape[1]

    # Pad embedding dim to 128 lanes: lane-dense x loads; zero rows in w1 are inert.
    E_pad = _round_up(E, _LANE)
    if E_pad != E:
        x = jnp.pad(x, ((0, 0), (0, E_pad - E)))
        w1_t = jnp.pad(w1_t, ((0, E_pad - E), (0, 0)))

    # Pad hidden dim to 128 lanes (H=256 already is, but stay general).
    H_pad = _round_up(H, _LANE)
    if H_pad != H:
        w1_t = jnp.pad(w1_t, ((0, 0), (0, H_pad - H)))
        b1 = jnp.pad(b1, ((0, 0), (0, H_pad - H)))
        w2_t = jnp.pad(w2_t, ((0, H_pad - H), (0, 0)))

    # Pad class dim to 128 lanes: unmasked (lane-dense) output stores.
    C_pad = _round_up(C, _LANE)
    w2_p = jnp.pad(w2_t, ((0, 0), (0, C_pad - C))).astype(compute_dtype)
    b2_p = jnp.pad(b2, ((0, 0), (0, C_pad - C)),
                   constant_values=_NEG_BIG).astype(jnp.float32)

    # Batch tile: at least 128 rows (MXU occupancy), capped at block_b.
    tb = min(_round_up(block_b, _LANE), _round_up(max(B, 1), _LANE))
    B_pad = _round_up(B, tb)
    if B_pad != B:
        x = jnp.pad(x, ((0, B_pad - B), (0, 0)))

    x_c = x.astype(compute_dtype)
    w1_c = w1_t.astype(compute_dtype)
    b1_c = b1.astype(jnp.float32)

    grid = (B_pad // tb,)
    isz = jnp.dtype(compute_dtype).itemsize

    cost = pl.CostEstimate(
        flops=2 * B_pad * (E_pad * H_pad + H_pad * C_pad),
        transcendentals=B_pad * C_pad,
        bytes_accessed=(B_pad * E_pad * isz + E_pad * H_pad * isz + H_pad * 4
                        + H_pad * C_pad * isz + C_pad * 4 + B_pad * C_pad * 4),
    )

    out_pad = pl.pallas_call(
        _classification_kernel,
        out_shape=jax.ShapeDtypeStruct((B_pad, C_pad), jnp.float32),
        grid=grid,
        in_specs=[
            pl.BlockSpec((tb, E_pad), lambda i: (i, 0)),     # x: tiled over batch
            pl.BlockSpec((E_pad, H_pad), lambda i: (0, 0)),  # weights stay VMEM-resident
            pl.BlockSpec((1, H_pad), lambda i: (0, 0)),
            pl.BlockSpec((H_pad, C_pad), lambda i: (0, 0)),
            pl.BlockSpec((1, C_pad), lambda i: (0, 0)),
        ],
        out_specs=pl.BlockSpec((tb, C_pad), lambda i: (i, 0)),
        compiler_params=pltpu.CompilerParams(
            dimension_semantics=("parallel",),               # megacore-shardable
            vmem_limit_bytes=32 * 1024 * 1024,               # fits v7x's 64 MiB VMEM
        ),
        cost_estimate=cost,
    )(x_c, w1_c, b1_c, w2_p, b2_p)

    return out_pad[:B, :C]


def _ref_forward(x, w1_t, b1, w2_t, b2):
    h = jnp.maximum(x @ w1_t + b1, 0.0)
    logits = h @ w2_t + b2
    return jax.nn.log_softmax(logits, axis=1)


if __name__ == "__main__":
    batch, emb_size, hidden, num_classes = 8, 32, 256, 10

    key = jax.random.PRNGKey(0)
    k_x, k_w1, k_b1, k_w2, k_b2 = jax.random.split(key, 5)

    x = jax.random.normal(k_x, (batch, emb_size), dtype=jnp.float32)

    # Deterministic init mimicking nn.Linear's uniform(-1/sqrt(fan_in), 1/sqrt(fan_in)).
    bound1 = 1.0 / jnp.sqrt(emb_size)
    w1_t = jax.random.uniform(k_w1, (emb_size, hidden), jnp.float32, -bound1, bound1)
    b1 = jax.random.uniform(k_b1, (1, hidden), jnp.float32, -bound1, bound1)

    bound2 = 1.0 / jnp.sqrt(hidden)
    w2_t = jax.random.uniform(k_w2, (hidden, num_classes), jnp.float32, -bound2, bound2)
    b2 = jax.random.uniform(k_b2, (1, num_classes), jnp.float32, -bound2, bound2)

    out = classification_forward(x, w1_t, b1, w2_t, b2)
    jax.block_until_ready(out)

    ref = _ref_forward(x, w1_t, b1, w2_t, b2)
    assert out.shape == (batch, num_classes)
    assert jnp.allclose(out, ref, atol=1e-5, rtol=1e-5)

    print("KERNEL_OK")
</pallas_src>

<mosaic_0001>
module attributes {stable_mosaic.version = 11 : i64} {
  func.func @_classification_kernel(%arg0: i32, %arg1: memref<128x128xf32, #tpu.memory_space<vmem>>, %arg2: memref<128x256xf32, #tpu.memory_space<vmem>>, %arg3: memref<1x256xf32, #tpu.memory_space<vmem>>, %arg4: memref<256x128xf32, #tpu.memory_space<vmem>>, %arg5: memref<1x128xf32, #tpu.memory_space<vmem>>, %arg6: memref<128x128xf32, #tpu.memory_space<vmem>>) attributes {dimension_semantics = [#tpu.dimension_semantics<parallel>], iteration_bounds = array<i64: 1>, scalar_prefetch = 0 : i64, scratch_operands = 0 : i64, tpu.core_type = #tpu.core_type<tc>, window_params = [{transform_indices = @transform_0, window_bounds = array<i64: 128, 128>}, {pipeline_mode = #tpu.pipeline_mode<synchronous>, transform_indices = @transform_1, window_bounds = array<i64: 128, 256>}, {pipeline_mode = #tpu.pipeline_mode<synchronous>, transform_indices = @transform_2, window_bounds = array<i64: 1, 256>}, {pipeline_mode = #tpu.pipeline_mode<synchronous>, transform_indices = @transform_3, window_bounds = array<i64: 256, 128>}, {pipeline_mode = #tpu.pipeline_mode<synchronous>, transform_indices = @transform_4, window_bounds = array<i64: 1, 128>}, {transform_indices = @transform_5, window_bounds = array<i64: 128, 128>}]} {
    %c0 = arith.constant 0 : index
    %c0_0 = arith.constant 0 : index
    %0 = vector.load %arg1[%c0, %c0_0] : memref<128x128xf32, #tpu.memory_space<vmem>>, vector<128x128xf32>
    %c0_1 = arith.constant 0 : index
    %c0_2 = arith.constant 0 : index
    %1 = vector.load %arg2[%c0_1, %c0_2] : memref<128x256xf32, #tpu.memory_space<vmem>>, vector<128x256xf32>
    %cst = arith.constant dense<0.000000e+00> : vector<128x256xf32>
    %2 = tpu.matmul %0, %1, %cst {dimension_numbers = #tpu.dot_dimension_numbers<[1], [0], [0], [1], [0, 0, 1, 1], [], []>} : vector<128x128xf32>, vector<128x256xf32>, vector<128x256xf32> -> vector<128x256xf32>
    %c0_3 = arith.constant 0 : index
    %c0_4 = arith.constant 0 : index
    %3 = vector.load %arg3[%c0_3, %c0_4] : memref<1x256xf32, #tpu.memory_space<vmem>>, vector<1x256xf32>
    %4 = vector.broadcast %3 : vector<1x256xf32> to vector<128x256xf32>
    %5 = arith.addf %2, %4 : vector<128x256xf32>
    %cst_5 = arith.constant 0.000000e+00 : f32
    %6 = vector.broadcast %cst_5 : f32 to vector<128x256xf32>
    %7 = arith.maximumf %5, %6 : vector<128x256xf32>
    %c0_6 = arith.constant 0 : index
    %c0_7 = arith.constant 0 : index
    %8 = vector.load %arg4[%c0_6, %c0_7] : memref<256x128xf32, #tpu.memory_space<vmem>>, vector<256x128xf32>
    %cst_8 = arith.constant dense<0.000000e+00> : vector<128x128xf32>
    %9 = tpu.matmul %7, %8, %cst_8 {dimension_numbers = #tpu.dot_dimension_numbers<[1], [0], [0], [1], [0, 0, 1, 1], [], []>} : vector<128x256xf32>, vector<256x128xf32>, vector<128x128xf32> -> vector<128x128xf32>
    %c0_9 = arith.constant 0 : index
    %c0_10 = arith.constant 0 : index
    %10 = vector.load %arg5[%c0_9, %c0_10] : memref<1x128xf32, #tpu.memory_space<vmem>>, vector<1x128xf32>
    %11 = vector.broadcast %10 : vector<1x128xf32> to vector<128x128xf32>
    %12 = arith.addf %9, %11 : vector<128x128xf32>
    %cst_11 = arith.constant dense<0xFF800000> : vector<128xf32>
    %13 = vector.multi_reduction <maximumf>, %12, %cst_11 [1] : vector<128x128xf32> to vector<128xf32>
    %14 = vector.shape_cast %13 : vector<128xf32> to vector<128x1xf32>
    %15 = vector.broadcast %14 : vector<128x1xf32> to vector<128x128xf32>
    %16 = arith.subf %12, %15 : vector<128x128xf32>
    %17 = math.exp %16 : vector<128x128xf32>
    %cst_12 = arith.constant dense<0.000000e+00> : vector<128xf32>
    %18 = vector.multi_reduction <add>, %17, %cst_12 [1] : vector<128x128xf32> to vector<128xf32>
    %19 = vector.shape_cast %18 : vector<128xf32> to vector<128x1xf32>
    %20 = math.log %19 : vector<128x1xf32>
    %21 = vector.broadcast %20 : vector<128x1xf32> to vector<128x128xf32>
    %22 = arith.subf %16, %21 : vector<128x128xf32>
    %c0_13 = arith.constant 0 : index
    %c0_14 = arith.constant 0 : index
    %23 = vector.load %arg6[%c0_13, %c0_14] : memref<128x128xf32, #tpu.memory_space<vmem>>, vector<128x128xf32>
    tpu.vector_store %arg6[%c0_13, %c0_14], %22 {strides = array<i32>} : memref<128x128xf32, #tpu.memory_space<vmem>>, vector<128x128xf32>,
    return
  }
  func.func @transform_0(%arg0: i32) -> (i32, i32) {
    %c0_i32 = arith.constant 0 : i32
    %c0_i32_0 = arith.constant 0 : i32
    return %arg0, %c0_i32 : i32, i32
  }
  func.func @transform_1(%arg0: i32) -> (i32, i32) {
    %c0_i32 = arith.constant 0 : i32
    %c0_i32_0 = arith.constant 0 : i32
    %c0_i32_1 = arith.constant 0 : i32
    return %c0_i32, %c0_i32_0 : i32, i32
  }
  func.func @transform_2(%arg0: i32) -> (i32, i32) {
    %c0_i32 = arith.constant 0 : i32
    %c0_i32_0 = arith.constant 0 : i32
    %c0_i32_1 = arith.constant 0 : i32
    return %c0_i32, %c0_i32_0 : i32, i32
  }
  func.func @transform_3(%arg0: i32) -> (i32, i32) {
    %c0_i32 = arith.constant 0 : i32
    %c0_i32_0 = arith.constant 0 : i32
    %c0_i32_1 = arith.constant 0 : i32
    return %c0_i32, %c0_i32_0 : i32, i32
  }
  func.func @transform_4(%arg0: i32) -> (i32, i32) {
    %c0_i32 = arith.constant 0 : i32
    %c0_i32_0 = arith.constant 0 : i32
    %c0_i32_1 = arith.constant 0 : i32
    return %c0_i32, %c0_i32_0 : i32, i32
  }
  func.func @transform_5(%arg0: i32) -> (i32, i32) {
    %c0_i32 = arith.constant 0 : i32
    %c0_i32_0 = arith.constant 0 : i32
    return %arg0, %c0_i32 : i32, i32
  }
}

</mosaic_0001>

<bundles_post_ra>
// kernel: tpu_custom_call.1
= control target key start
LH: loop header
LB: loop body
LE: loop exit
PB: predicated region body
PF: predicated region fallthrough
CT: control target
= control target key end

     0   :  { %10 = vsyncpa [#allocation3], 0  ;;  %s1305_s0 = inlined_call_operand.hbm [shape: f32[128,128], index: 0, kind: input, shape index: {}]   ;;  %s1306_s1 = inlined_call_operand.hbm [shape: f32[128,256], index: 1, kind: input, shape index: {}]   ;;  %s1307_s2 = inlined_call_operand.vmem [shape: f32[1,256], index: 2, kind: input, shape index: {}]   ;;  %s1308_s3 = inlined_call_operand.hbm [shape: f32[256,128], index: 3, kind: input, shape index: {}]   ;;  %s1309_s4 = inlined_call_operand.vmem [shape: f32[1,128], index: 4, kind: input, shape index: {}]   ;;  %s1310_s5 = inlined_call_operand.hbm [shape: f32[128,128], index: 5, kind: output, shape index: {}]  }
   0x1   :  { %11 = vsyncpa [#allocation6], 0 }
   0x2   :  { %12 = vsyncpa [#allocation4], 0  ;;  %s1005_s18 = smov [#allocation5]   ;;  %s911_s22 = scalar_lea.hbm %s1306_s1, 4096 }
   0x3   :  { %s30_s19 = sshll.u32 %s1005_s18, 4  ;;  %p912_p0 = scmp.ne.s32.totalorder %s1306_s1, %s911_s22  ;;  %s31_s19 = int_to_ptr.vmem [resolvable:$true] %s30_s19 }
   0x4   :  { %p915_p1 = scmp.lt.u32.totalorder %s911_s22, %s1306_s1 }
   0x6   :  { %p917_p2 = pnand %p915_p1, %p912_p0 }
   0x8   :  { %920 = shalt.err (!%p917_p2)
}
   0x9   :  { %s921_s27 = scalar_lea.vmem %s31_s19, 4096  ;;  %p926_p4 = scmp.lt.s32.totalorder %s31_s19, %s31_s19 }
   0xa   :  { %p922_p3 = scmp.ne.s32.totalorder %s31_s19, %s921_s27  ;;  %p927_p5 = scmp.lt.s32.totalorder %s921_s27, %s921_s27 }
   0xc   :  { %p928_p6 = por %p927_p5, %p926_p4 }
   0xe   :  { %p929_p7 = pnand %p928_p6, %p922_p3 }
  0x10   :  { %932 = shalt.err (!%p929_p7)
}
  0x11   :  { %s1006_s28 = smov 256   ;;  %s1007_s29 = smov 16  }
  0x12   :  { %36 = dma.hbm_to_vmem [thread:$0]  %s1306_s1, 4096, %s31_s19, [#allocation6], %s1006_s28, %s1006_s28, %s1007_s29  }
  0x13   :  { %s1008_s7 = smov [#allocation2]   ;;  %s933_s11 = scalar_lea.hbm %s1305_s0, 2048 }
  0x14   :  { %s18_s8 = sshll.u32 %s1008_s7, 4  ;;  %p934_p8 = scmp.ne.s32.totalorder %s1305_s0, %s933_s11  ;;  %s19_s8 = int_to_ptr.vmem [resolvable:$true] %s18_s8 }
  0x15   :  { %p937_p9 = scmp.lt.u32.totalorder %s933_s11, %s1305_s0 }
  0x17   :  { %p939_p10 = pnand %p937_p9, %p934_p8 }
  0x19   :  { %942 = shalt.err (!%p939_p10)
}
  0x1a   :  { %s943_s16 = scalar_lea.vmem %s19_s8, 2048  ;;  %p948_p12 = scmp.lt.s32.totalorder %s19_s8, %s19_s8 }
  0x1b   :  { %p944_p11 = scmp.ne.s32.totalorder %s19_s8, %s943_s16  ;;  %p949_p13 = scmp.lt.s32.totalorder %s943_s16, %s943_s16 }
  0x1d   :  { %p950_p0 = por %p949_p13, %p948_p12 }
  0x1f   :  { %p951_p1 = pnand %p950_p0, %p944_p11 }
  0x21   :  { %954 = shalt.err (!%p951_p1)
}
  0x22   :  { %s1009_s1 = smov 128   ;;  %s1010_s17 = smov 8  }
  0x23   :  { %24 = dma.hbm_to_vmem [thread:$0]  %s1305_s0, 2048, %s19_s8, [#allocation3], %s1009_s1, %s1009_s1, %s1010_s17  }
  0x24   :  { %s1011_s20 = smov [#allocation7]   ;;  %s955_s24 = scalar_lea.hbm %s1308_s3, 4096 }
  0x25   :  { %s44_s21 = sshll.u32 %s1011_s20, 4  ;;  %p956_p2 = scmp.ne.s32.totalorder %s1308_s3, %s955_s24  ;;  %s45_s21 = int_to_ptr.vmem [resolvable:$true] %s44_s21 }
  0x26   :  { %p959_p3 = scmp.lt.u32.totalorder %s955_s24, %s1308_s3 }
  0x28   :  { %p961_p4 = pnand %p959_p3, %p956_p2 }
  0x2a   :  { %964 = shalt.err (!%p961_p4)
}
  0x2b   :  { %s965_s29 = scalar_lea.vmem %s45_s21, 4096  ;;  %p970_p6 = scmp.lt.s32.totalorder %s45_s21, %s45_s21 }
  0x2c   :  { %p966_p5 = scmp.ne.s32.totalorder %s45_s21, %s965_s29  ;;  %p971_p7 = scmp.lt.s32.totalorder %s965_s29, %s965_s29 }
  0x2e   :  { %p972_p8 = por %p971_p7, %p970_p6 }
  0x30   :  { %p973_p9 = pnand %p972_p8, %p966_p5 }
  0x32   :  { %976 = shalt.err (!%p973_p9)
}
  0x33   :  { %50 = dma.hbm_to_vmem [thread:$0]  %s1308_s3, 4096, %s45_s21, [#allocation6], %s1009_s1, %s1009_s1, %s1010_s17  }
  0x34   :  { %999 = dma.done.wait [#allocation3], 2048  }
  0x35   :  { %1000 = vsyncadd [#allocation3], 4294965248 }
  0x36   :  { %1001 = dma.done.wait [#allocation6], 8192  }
  0x37   :  { %1002 = vsyncadd [#allocation6], 4294959104  ;;  %v1012_v0 = vmov 0.0   ;;  %v79_v1 = vld [vmem:[#allocation5 + $0x8] sm:$0xff]  ;;  %v81_v2 = vld [vmem:[#allocation5 + $0x18] sm:$0xff] }
  0x38   :  { %186 = vmatprep.mubr.f32.mxu0 %v1012_v0  ;;  %v78_v3 = vld [vmem:[#allocation5] sm:$0xff]  ;;  %v774_v4 = vpack.c.bf16 %v81_v2, %v79_v1  ;;  %v80_v5 = vld [vmem:[#allocation5 + $0x10] sm:$0xff]  ;;  %v83_v6 = vld [vmem:[#allocation5 + $0x28] sm:$0xff] }
  0x39   :  { %v85_v7 = vld [vmem:[#allocation5 + $0x38] sm:$0xff]  ;;  %v776_v8 = vpack.c.bf16 %v80_v5, %v78_v3  ;;  %v82_v10 = vld [vmem:[#allocation5 + $0x20] sm:$0xff]  ;;  %v84_v11 = vld [vmem:[#allocation5 + $0x30] sm:$0xff] }
  0x3a   :  { %v778_v9 = vpack.c.bf16 %v85_v7, %v83_v6  ;;  %v87_v12 = vld [vmem:[#allocation5 + $0x48] sm:$0xff]  ;;  %775 = vmatprep.subr.bf16.mxu0 %v774_v4  ;;  %v89_v13 = vld [vmem:[#allocation5 + $0x58] sm:$0xff]  ;;  %v780_v14 = vpack.c.bf16 %v84_v11, %v82_v10  ;;  %v86_v16 = vld [vmem:[#allocation5 + $0x40] sm:$0xff] }
  0x3b   :  { %777 = vmatpush1.bf16.msra.mxu0 %v776_v8  ;;  %v782_v15 = vpack.c.bf16 %v89_v13, %v87_v12  ;;  %v88_v17 = vld [vmem:[#allocation5 + $0x50] sm:$0xff]  ;;  %v91_v18 = vld [vmem:[#allocation5 + $0x68] sm:$0xff]  ;;  %v93_v19 = vld [vmem:[#allocation5 + $0x78] sm:$0xff] }
  0x3c   :  { %779 = vmatprep.subr.bf16.mxu0 %v778_v9  ;;  %v784_v20 = vpack.c.bf16 %v88_v17, %v86_v16  ;;  %v786_v21 = vpack.c.bf16 %v93_v19, %v91_v18  ;;  %v90_v22 = vld [vmem:[#allocation5 + $0x60] sm:$0xff]  ;;  %v92_v23 = vld [vmem:[#allocation5 + $0x70] sm:$0xff]  ;;  %v95_v24 = vld [vmem:[#allocation5 + $0x88] sm:$0xff] }
  0x3d   :  { %v97_v25 = vld [vmem:[#allocation5 + $0x98] sm:$0xff]  ;;  %v788_v26 = vpack.c.bf16 %v92_v23, %v90_v22  ;;  %v94_v28 = vld [vmem:[#allocation5 + $0x80] sm:$0xff]  ;;  %v96_v29 = vld [vmem:[#allocation5 + $0x90] sm:$0xff] }
  0x3e   :  { %v790_v27 = vpack.c.bf16 %v97_v25, %v95_v24  ;;  %v99_v30 = vld [vmem:[#allocation5 + $0xa8] sm:$0xff]  ;;  %v101_v31 = vld [vmem:[#allocation5 + $0xb8] sm:$0xff]  ;;  %v98_v32 = vld [vmem:[#allocation5 + $0xa0] sm:$0xff]  ;;  %v792_v34 = vpack.c.bf16 %v96_v29, %v94_v28 }
  0x3f   :  { %781 = vmatpush1.bf16.msra.mxu0 %v780_v14  ;;  %v100_v33 = vld [vmem:[#allocation5 + $0xb0] sm:$0xff]  ;;  %v103_v35 = vld [vmem:[#allocation5 + $0xc8] sm:$0xff]  ;;  %v105_v36 = vld [vmem:[#allocation5 + $0xd8] sm:$0xff]  ;;  %v794_v40 = vpack.c.bf16 %v101_v31, %v99_v30 }
  0x40   :  { %783 = vmatprep.subr.bf16.mxu0 %v782_v15  ;;  %v331_v37 = vld [vmem:[#allocation7 + $0x80] sm:$0xff]  ;;  %v332_v38 = vld [vmem:[#allocation7 + $0x88] sm:$0xff]  ;;  %v333_v43 = vld [vmem:[#allocation7 + $0x90] sm:$0xff]  ;;  %v796_v51 = vpack.c.bf16 %v100_v33, %v98_v32  ;;  %v798_v55 = vpack.c.bf16 %v105_v36, %v103_v35 }
  0x41   :  { %v315_v39 = vld [vmem:[#allocation7] sm:$0xff]  ;;  %v806_v41 = vpack.c.bf16 %v332_v38, %v331_v37  ;;  %v316_v42 = vld [vmem:[#allocation7 + $0x8] sm:$0xff]  ;;  %v334_v44 = vld [vmem:[#allocation7 + $0x98] sm:$0xff] }
  0x42   :  { %v808_v45 = vpack.c.bf16 %v316_v42, %v315_v39  ;;  %v810_v46 = vpack.c.bf16 %v334_v44, %v333_v43  ;;  %v317_v47 = vld [vmem:[#allocation7 + $0x10] sm:$0xff]  ;;  %v318_v48 = vld [vmem:[#allocation7 + $0x18] sm:$0xff]  ;;  %v335_v49 = vld [vmem:[#allocation7 + $0xa0] sm:$0xff] }
  0x43   :  { %785 = vmatpush1.bf16.msra.mxu0 %v784_v20  ;;  %807 = vmatprep.subr.bf16.mxu1 %v806_v41  ;;  %v336_v50 = vld [vmem:[#allocation7 + $0xa8] sm:$0xff]  ;;  %v102_v52 = vld [vmem:[#allocation5 + $0xc0] sm:$0xff]  ;;  %v104_v53 = vld [vmem:[#allocation5 + $0xd0] sm:$0xff]  ;;  %v812_v54 = vpack.c.bf16 %v318_v48, %v317_v47 }
  0x44   :  { %787 = vmatprep.subr.bf16.mxu0 %v786_v21  ;;  %809 = vmatpush3.bf16.msra.mxu1 %v808_v45  ;;  %v107_v56 = vld [vmem:[#allocation5 + $0xe8] sm:$0xff]  ;;  %v814_v57 = vpack.c.bf16 %v336_v50, %v335_v49  ;;  %v319_v58 = vld [vmem:[#allocation7 + $0x20] sm:$0xff]  ;;  %v109_v60 = vld [vmem:[#allocation5 + $0xf8] sm:$0xff]  ;;  %v800_v63 = vpack.c.bf16 %v104_v53, %v102_v52  ;;  %v112_v50 = vlaneseq }
  0x45   :  { %811 = vmatprep.subr.bf16.mxu1 %v810_v46  ;;  %v320_v59 = vld [vmem:[#allocation7 + $0x28] sm:$0xff]  ;;  %v337_v61 = vld [vmem:[#allocation7 + $0xb0] sm:$0xff]  ;;  %v338_v62 = vld [vmem:[#allocation7 + $0xb8] sm:$0xff]  ;;  %v802_v3 = vpack.c.bf16 %v109_v60, %v107_v56 }
  0x46   :  { %v106_v1 = vld [vmem:[#allocation5 + $0xe0] sm:$0xff]  ;;  %v816_v2 = vpack.c.bf16 %v320_v59, %v319_v58  ;;  %v108_v4 = vld [vmem:[#allocation5 + $0xf0] sm:$0xff]  ;;  %v818_v5 = vpack.c.bf16 %v338_v62, %v337_v61  ;;  %v322_v7 = vld [vmem:[#allocation7 + $0x38] sm:$0xff] }
  0x47   :  { %789 = vmatpush1.bf16.msra.mxu0 %v788_v26  ;;  %v321_v6 = vld [vmem:[#allocation7 + $0x30] sm:$0xff]  ;;  %v339_v8 = vld [vmem:[#allocation7 + $0xc0] sm:$0xff]  ;;  %v340_v9 = vld [vmem:[#allocation7 + $0xc8] sm:$0xff]  ;;  %v804_v10 = vpack.c.bf16 %v108_v4, %v106_v1 }
  0x48   :  { %791 = vmatprep.subr.bf16.mxu0 %v790_v27  ;;  %813 = vmatpush3.bf16.msra.mxu1 %v812_v54  ;;  %v820_v11 = vpack.c.bf16 %v322_v7, %v321_v6  ;;  %v822_v12 = vpack.c.bf16 %v340_v9, %v339_v8  ;;  %v323_v13 = vld [vmem:[#allocation7 + $0x40] sm:$0xff]  ;;  %v324_v14 = vld [vmem:[#allocation7 + $0x48] sm:$0xff]  ;;  %v341_v15 = vld [vmem:[#allocation7 + $0xd0] sm:$0xff] }
  0x49   :  { %815 = vmatprep.subr.bf16.mxu1 %v814_v57  ;;  %v342_v16 = vld [vmem:[#allocation7 + $0xd8] sm:$0xff]  ;;  %v62_v17 = vld [vmem:[#allocation2] sm:$0xff]  ;;  %v824_v18 = vpack.c.bf16 %v324_v14, %v323_v13  ;;  %v325_v20 = vld [vmem:[#allocation7 + $0x50] sm:$0xff] }
  0x4a   :  { %v826_v19 = vpack.c.bf16 %v342_v16, %v341_v15  ;;  %v326_v21 = vld [vmem:[#allocation7 + $0x58] sm:$0xff]  ;;  %v343_v22 = vld [vmem:[#allocation7 + $0xe0] sm:$0xff]  ;;  %v344_v23 = vld [vmem:[#allocation7 + $0xe8] sm:$0xff] }
  0x4b   :  { %793 = vmatpush1.bf16.msra.mxu0 %v792_v34  ;;  %v63_v24 = vld [vmem:[#allocation2 + $0x8] sm:$0xff]  ;;  %v828_v25 = vpack.c.bf16 %v326_v21, %v325_v20  ;;  %v830_v26 = vpack.c.bf16 %v344_v23, %v343_v22  ;;  %v64_v27 = vld [vmem:[#allocation2 + $0x10] sm:$0xff]  ;;  %v65_v28 = vld [vmem:[#allocation2 + $0x18] sm:$0xff] }
  0x4c   :  { %795 = vmatprep.subr.bf16.mxu0 %v794_v40  ;;  %817 = vmatpush3.bf16.msra.mxu1 %v816_v2  ;;  %v66_v29 = vld [vmem:[#allocation2 + $0x20] sm:$0xff]  ;;  %v67_v30 = vld [vmem:[#allocation2 + $0x28] sm:$0xff]  ;;  %v68_v31 = vld [vmem:[#allocation2 + $0x30] sm:$0xff] }
  0x4d   :  { %819 = vmatprep.subr.bf16.mxu1 %v818_v5  ;;  %v69_v32 = vld [vmem:[#allocation2 + $0x38] sm:$0xff]  ;;  %v70_v33 = vld [vmem:[#allocation2 + $0x40] sm:$0xff]  ;;  %v71_v34 = vld [vmem:[#allocation2 + $0x48] sm:$0xff] }
  0x4e   :  { %v72_v35 = vld [vmem:[#allocation2 + $0x50] sm:$0xff]  ;;  %v73_v36 = vld [vmem:[#allocation2 + $0x58] sm:$0xff]  ;;  %v74_v37 = vld [vmem:[#allocation2 + $0x60] sm:$0xff] }
  0x4f   :  { %797 = vmatpush1.bf16.msra.mxu0 %v796_v51  ;;  %v75_v38 = vld [vmem:[#allocation2 + $0x68] sm:$0xff]  ;;  %v76_v39 = vld [vmem:[#allocation2 + $0x70] sm:$0xff]  ;;  %v77_v40 = vld [vmem:[#allocation2 + $0x78] sm:$0xff]  ;;  %v113_v51 = vshrl.u32 %v112_v50, 7 }
  0x50   :  { %799 = vmatprep.subr.bf16.mxu0 %v798_v55  ;;  %821 = vmatpush3.bf16.msra.mxu1 %v820_v11  ;;  %v327_v41 = vld [vmem:[#allocation7 + $0x60] sm:$0xff]  ;;  %v328_v42 = vld [vmem:[#allocation7 + $0x68] sm:$0xff]  ;;  %v345_v44 = vld [vmem:[#allocation7 + $0xf0] sm:$0xff] }
  0x51   :  { %823 = vmatprep.subr.bf16.mxu1 %v822_v12  ;;  %v832_v43 = vpack.c.bf16 %v328_v42, %v327_v41  ;;  %v346_v45 = vld [vmem:[#allocation7 + $0xf8] sm:$0xff]  ;;  %v329_v47 = vld [vmem:[#allocation7 + $0x70] sm:$0xff]  ;;  %v114_v52 = vsub.s32 0, %v113_v51  ;;  %v118_v53 = vsub.s32 1, %v113_v51 }
  0x52   :  { %v834_v46 = vpack.c.bf16 %v346_v45, %v345_v44  ;;  %v330_v48 = vld [vmem:[#allocation7 + $0x78] sm:$0xff] }
  0x53   :  { %801 = vmatpush1.bf16.msra.mxu0 %v800_v63  ;;  %v836_v49 = vpack.c.bf16 %v330_v48, %v329_v47 }
  0x54   :  { %803 = vmatprep.subr.bf16.mxu0 %v802_v3  ;;  %825 = vmatpush3.bf16.msra.mxu1 %v824_v18 }
  0x55   :  { %827 = vmatprep.subr.bf16.mxu1 %v826_v19 }
  0x57   :  { %805 = vmatpush1.bf16.msra.mxu0 %v804_v10 }
  0x58   :  { %829 = vmatpush3.bf16.msra.mxu1 %v828_v25 }
  0x59   :  { %831 = vmatprep.subr.bf16.mxu1 %v830_v26 }
  0x5a   :  { %187 = vmatmul.mubr.f32.vlgmr.msra.gmra.mrb[0].mxu0 %v62_v17 }
  0x5b   :  { %192 = vmatprep.mubr.f32.mxu0 %v1012_v0 }
  0x5c   :  { %833 = vmatpush3.bf16.msra.mxu1 %v832_v43 }
  0x5d   :  { %835 = vmatprep.subr.bf16.mxu1 %v834_v46 }
  0x5e   :  { %193 = vmatmul.mubr.f32.gmra.mrb[2].mxu0 %v63_v24 }
  0x5f   :  { %198 = vmatprep.mubr.f32.mxu0 %v1012_v0 }
  0x60   :  { %837 = vmatpush3.bf16.msra.mxu1 %v836_v49 }
  0x62   :  { %199 = vmatmul.mubr.f32.gmra.mrb[4].mxu0 %v64_v27 }
  0x63   :  { %204 = vmatprep.mubr.f32.mxu0 %v1012_v0 }
  0x66   :  { %205 = vmatmul.mubr.f32.gmra.mrb[6].mxu0 %v65_v28 }
  0x67   :  { %210 = vmatprep.mubr.f32.mxu0 %v1012_v0 }
  0x6a   :  { %211 = vmatmul.mubr.f32.gmra.mrb[8].mxu0 %v66_v29 }
  0x6b   :  { %216 = vmatprep.mubr.f32.mxu0 %v1012_v0 }
  0x6e   :  { %217 = vmatmul.mubr.f32.gmra.mrb[10].mxu0 %v67_v30 }
  0x6f   :  { %222 = vmatprep.mubr.f32.mxu0 %v1012_v0 }
  0x72   :  { %223 = vmatmul.mubr.f32.gmra.mrb[12].mxu0 %v68_v31 }
  0x73   :  { %228 = vmatprep.mubr.f32.mxu0 %v1012_v0 }
  0x76   :  { %229 = vmatmul.mubr.f32.gmra.mrb[14].mxu0 %v69_v32 }
  0x77   :  { %234 = vmatprep.mubr.f32.mxu0 %v1012_v0 }
  0x7a   :  { %235 = vmatmul.mubr.f32.gmra.mrb[16].mxu0 %v70_v33 }
  0x7b   :  { %240 = vmatprep.mubr.f32.mxu0 %v1012_v0 }
  0x7e   :  { %241 = vmatmul.mubr.f32.gmra.mrb[18].mxu0 %v71_v34 }
  0x7f   :  { %246 = vmatprep.mubr.f32.mxu0 %v1012_v0 }
  0x82   :  { %247 = vmatmul.mubr.f32.gmra.mrb[20].mxu0 %v72_v35 }
  0x83   :  { %252 = vmatprep.mubr.f32.mxu0 %v1012_v0 }
  0x86   :  { %253 = vmatmul.mubr.f32.gmra.mrb[22].mxu0 %v73_v36 }
  0x87   :  { %258 = vmatprep.mubr.f32.mxu0 %v1012_v0 }
  0x8a   :  { %259 = vmatmul.mubr.f32.gmra.mrb[24].mxu0 %v74_v37 }
  0x8b   :  { %264 = vmatprep.mubr.f32.mxu0 %v1012_v0 }
  0x8e   :  { %265 = vmatmul.mubr.f32.gmra.mrb[26].mxu0 %v75_v38 }
  0x8f   :  { %270 = vmatprep.mubr.f32.mxu0 %v1012_v0 }
  0x92   :  { %271 = vmatmul.mubr.f32.gmra.mrb[28].mxu0 %v76_v39 }
  0x93   :  { %276 = vmatprep.mubr.f32.mxu0 %v1012_v0  ;;  %v110_v0 = vld [vmem:[%s1307_s2] sm:$0x3] }
  0x94   :  { %v1105_v54 = vrot.slane %v110_v0, %v114_v52  ;;  %v1107_v55 = vrot.slane %v110_v0, %v118_v53 }
  0x96   :  { %277 = vmatmul.mubr.f32.gmra.mrb[30].mxu0 %v77_v40 }
 0x12d   :  { %v188_v56 = vpop.f32.mrb[0].mxu0 }
 0x12e   :  { %v189_v57 = vadd.f32 %v188_v56, %v1105_v54  ;;  %v190_v58 = vpop.f32.mrb[1].mxu0 }
 0x12f   :  { %v191_v59 = vadd.f32 %v190_v58, %v1107_v55 }
 0x130   :  { %v283_v62 = vmax.f32 %v189_v57, 0.0 }
 0x131   :  { %v194_v60 = vpop.f32.mrb[2].mxu0  ;;  %v284_v61 = vmax.f32 %v191_v59, 0.0 }
 0x132   :  { %v195_v63 = vadd.f32 %v194_v60, %v1105_v54  ;;  %v196_v1 = vpop.f32.mrb[3].mxu0 }
 0x133   :  { %v197_v2 = vadd.f32 %v196_v1, %v1107_v55  ;;  %418 = vmatprep.mubr.f32.mxu1 %v284_v61 }
 0x134   :  { %419 = vmatmul.mubr.f32.vlgmr.msra.gmra.mrb[0].mxu1 %v283_v62  ;;  %v285_v5 = vmax.f32 %v195_v63, 0.0 }
 0x135   :  { %v286_v3 = vmax.f32 %v197_v2, 0.0  ;;  %v200_v4 = vpop.f32.mrb[4].mxu0 }
 0x136   :  { %v201_v6 = vadd.f32 %v200_v4, %v1105_v54  ;;  %v202_v7 = vpop.f32.mrb[5].mxu0 }
 0x137   :  { %v203_v8 = vadd.f32 %v202_v7, %v1107_v55  ;;  %423 = vmatprep.mubr.f32.mxu1 %v286_v3 }
 0x138   :  { %424 = vmatmul.mubr.f32.gmra.mrb[2].mxu1 %v285_v5  ;;  %v287_v11 = vmax.f32 %v201_v6, 0.0 }
 0x139   :  { %v288_v9 = vmax.f32 %v203_v8, 0.0  ;;  %v206_v10 = vpop.f32.mrb[6].mxu0 }
 0x13a   :  { %v207_v12 = vadd.f32 %v206_v10, %v1105_v54  ;;  %v208_v13 = vpop.f32.mrb[7].mxu0 }
 0x13b   :  { %v209_v14 = vadd.f32 %v208_v13, %v1107_v55  ;;  %428 = vmatprep.mubr.f32.mxu1 %v288_v9 }
 0x13c   :  { %429 = vmatmul.mubr.f32.gmra.mrb[4].mxu1 %v287_v11  ;;  %v289_v17 = vmax.f32 %v207_v12, 0.0 }
 0x13d   :  { %v290_v15 = vmax.f32 %v209_v14, 0.0  ;;  %v212_v16 = vpop.f32.mrb[8].mxu0 }
 0x13e   :  { %v213_v18 = vadd.f32 %v212_v16, %v1105_v54  ;;  %v214_v19 = vpop.f32.mrb[9].mxu0 }
 0x13f   :  { %v215_v20 = vadd.f32 %v214_v19, %v1107_v55  ;;  %433 = vmatprep.mubr.f32.mxu1 %v290_v15 }
 0x140   :  { %434 = vmatmul.mubr.f32.gmra.mrb[6].mxu1 %v289_v17  ;;  %v291_v23 = vmax.f32 %v213_v18, 0.0 }
 0x141   :  { %v292_v21 = vmax.f32 %v215_v20, 0.0  ;;  %v218_v22 = vpop.f32.mrb[10].mxu0 }
 0x142   :  { %v219_v24 = vadd.f32 %v218_v22, %v1105_v54  ;;  %v220_v25 = vpop.f32.mrb[11].mxu0 }
 0x143   :  { %v221_v26 = vadd.f32 %v220_v25, %v1107_v55  ;;  %438 = vmatprep.mubr.f32.mxu1 %v292_v21 }
 0x144   :  { %439 = vmatmul.mubr.f32.gmra.mrb[8].mxu1 %v291_v23  ;;  %v293_v29 = vmax.f32 %v219_v24, 0.0 }
 0x145   :  { %v294_v27 = vmax.f32 %v221_v26, 0.0  ;;  %v224_v28 = vpop.f32.mrb[12].mxu0 }
 0x146   :  { %v225_v30 = vadd.f32 %v224_v28, %v1105_v54  ;;  %v226_v31 = vpop.f32.mrb[13].mxu0 }
 0x147   :  { %v227_v32 = vadd.f32 %v226_v31, %v1107_v55  ;;  %443 = vmatprep.mubr.f32.mxu1 %v294_v27 }
 0x148   :  { %444 = vmatmul.mubr.f32.gmra.mrb[10].mxu1 %v293_v29  ;;  %v295_v35 = vmax.f32 %v225_v30, 0.0  ;;  %v1144_v29 = vld [vmem:[%s1309_s4] ss:$0 sm:$0xff]  ;;  %s1013_s4 = smov [#allocation8]  }
 0x149   :  { %v296_v33 = vmax.f32 %v227_v32, 0.0  ;;  %v230_v34 = vpop.f32.mrb[14].mxu0  ;;  %s680_s8 = sshll.u32 %s1013_s4, 4  ;;  %s681_s8 = int_to_ptr.vmem [resolvable:$true] %s680_s8 }
 0x14a   :  { %v231_v36 = vadd.f32 %v230_v34, %v1105_v54  ;;  %v232_v37 = vpop.f32.mrb[15].mxu0  ;;  %s977_s9 = scalar_lea.vmem %s681_s8, 2048  ;;  %p982_p11 = scmp.lt.s32.totalorder %s681_s8, %s681_s8 }
 0x14b   :  { %v233_v38 = vadd.f32 %v232_v37, %v1107_v55  ;;  %448 = vmatprep.mubr.f32.mxu1 %v296_v33  ;;  %p978_p10 = scmp.ne.s32.totalorder %s681_s8, %s977_s9  ;;  %p983_p12 = scmp.lt.s32.totalorder %s977_s9, %s977_s9 }
 0x14c   :  { %449 = vmatmul.mubr.f32.gmra.mrb[12].mxu1 %v295_v35  ;;  %v297_v41 = vmax.f32 %v231_v36, 0.0 }
 0x14d   :  { %v298_v39 = vmax.f32 %v233_v38, 0.0  ;;  %v236_v40 = vpop.f32.mrb[16].mxu0  ;;  %p984_p13 = por %p983_p12, %p982_p11 }
 0x14e   :  { %v237_v42 = vadd.f32 %v236_v40, %v1105_v54  ;;  %v238_v43 = vpop.f32.mrb[17].mxu0 }
 0x14f   :  { %v239_v44 = vadd.f32 %v238_v43, %v1107_v55  ;;  %453 = vmatprep.mubr.f32.mxu1 %v298_v39  ;;  %p985_p0 = pnand %p984_p13, %p978_p10 }
 0x150   :  { %454 = vmatmul.mubr.f32.gmra.mrb[14].mxu1 %v297_v41  ;;  %v299_v47 = vmax.f32 %v237_v42, 0.0 }
 0x151   :  { %v300_v45 = vmax.f32 %v239_v44, 0.0  ;;  %v242_v46 = vpop.f32.mrb[18].mxu0 }
 0x152   :  { %v243_v48 = vadd.f32 %v242_v46, %v1105_v54  ;;  %v244_v49 = vpop.f32.mrb[19].mxu0 }
 0x153   :  { %v245_v50 = vadd.f32 %v244_v49, %v1107_v55  ;;  %458 = vmatprep.mubr.f32.mxu1 %v300_v45 }
 0x154   :  { %459 = vmatmul.mubr.f32.gmra.mrb[16].mxu1 %v299_v47  ;;  %v301_v0 = vmax.f32 %v243_v48, 0.0 }
 0x155   :  { %v302_v51 = vmax.f32 %v245_v50, 0.0  ;;  %v248_v52 = vpop.f32.mrb[20].mxu0 }
 0x156   :  { %v249_v53 = vadd.f32 %v248_v52, %v1105_v54  ;;  %v250_v56 = vpop.f32.mrb[21].mxu0 }
 0x157   :  { %v251_v57 = vadd.f32 %v250_v56, %v1107_v55  ;;  %463 = vmatprep.mubr.f32.mxu1 %v302_v51 }
 0x158   :  { %464 = vmatmul.mubr.f32.gmra.mrb[18].mxu1 %v301_v0  ;;  %v303_v60 = vmax.f32 %v249_v53, 0.0 }
 0x159   :  { %v304_v58 = vmax.f32 %v251_v57, 0.0  ;;  %v254_v59 = vpop.f32.mrb[22].mxu0 }
 0x15a   :  { %v255_v61 = vadd.f32 %v254_v59, %v1105_v54  ;;  %v256_v62 = vpop.f32.mrb[23].mxu0 }
 0x15b   :  { %v257_v63 = vadd.f32 %v256_v62, %v1107_v55  ;;  %468 = vmatprep.mubr.f32.mxu1 %v304_v58 }
 0x15c   :  { %469 = vmatmul.mubr.f32.gmra.mrb[20].mxu1 %v303_v60  ;;  %v305_v3 = vmax.f32 %v255_v61, 0.0 }
 0x15d   :  { %v306_v1 = vmax.f32 %v257_v63, 0.0  ;;  %v260_v2 = vpop.f32.mrb[24].mxu0 }
 0x15e   :  { %v261_v4 = vadd.f32 %v260_v2, %v1105_v54  ;;  %v262_v5 = vpop.f32.mrb[25].mxu0 }
 0x15f   :  { %v263_v6 = vadd.f32 %v262_v5, %v1107_v55  ;;  %473 = vmatprep.mubr.f32.mxu1 %v306_v1 }
 0x160   :  { %474 = vmatmul.mubr.f32.gmra.mrb[22].mxu1 %v305_v3  ;;  %v307_v9 = vmax.f32 %v261_v4, 0.0 }
 0x161   :  { %v308_v7 = vmax.f32 %v263_v6, 0.0  ;;  %v266_v8 = vpop.f32.mrb[26].mxu0 }
 0x162   :  { %v267_v10 = vadd.f32 %v266_v8, %v1105_v54  ;;  %v268_v11 = vpop.f32.mrb[27].mxu0 }
 0x163   :  { %v269_v12 = vadd.f32 %v268_v11, %v1107_v55  ;;  %478 = vmatprep.mubr.f32.mxu1 %v308_v7 }
 0x164   :  { %479 = vmatmul.mubr.f32.gmra.mrb[24].mxu1 %v307_v9  ;;  %v309_v15 = vmax.f32 %v267_v10, 0.0 }
 0x165   :  { %v310_v13 = vmax.f32 %v269_v12, 0.0  ;;  %v272_v14 = vpop.f32.mrb[28].mxu0 }
 0x166   :  { %v273_v16 = vadd.f32 %v272_v14, %v1105_v54  ;;  %v274_v17 = vpop.f32.mrb[29].mxu0 }
 0x167   :  { %v275_v18 = vadd.f32 %v274_v17, %v1107_v55  ;;  %483 = vmatprep.mubr.f32.mxu1 %v310_v13 }
 0x168   :  { %484 = vmatmul.mubr.f32.gmra.mrb[26].mxu1 %v309_v15  ;;  %v311_v21 = vmax.f32 %v273_v16, 0.0 }
 0x169   :  { %v312_v19 = vmax.f32 %v275_v18, 0.0  ;;  %v278_v20 = vpop.f32.mrb[30].mxu0 }
 0x16a   :  { %v279_v22 = vadd.f32 %v278_v20, %v1105_v54  ;;  %v280_v23 = vpop.f32.mrb[31].mxu0 }
 0x16b   :  { %v281_v24 = vadd.f32 %v280_v23, %v1107_v55  ;;  %488 = vmatprep.mubr.f32.mxu1 %v312_v19 }
 0x16c   :  { %489 = vmatmul.mubr.f32.gmra.mrb[28].mxu1 %v311_v21  ;;  %v313_v26 = vmax.f32 %v279_v22, 0.0 }
 0x16d   :  { %v314_v25 = vmax.f32 %v281_v24, 0.0 }
 0x16f   :  { %493 = vmatprep.mubr.f32.mxu1 %v314_v25 }
 0x170   :  { %494 = vmatmul.mubr.f32.gmra.mrb[30].mxu1 %v313_v26 }
 0x207   :  { %v726_v27 = vpop.f32.mrb[0].mxu1 }
 0x208   :  { %v727_v28 = vpop.f32.mrb[1].mxu1 }
 0x209   :  { %v728_v30 = vadd.f32 %v727_v28, %v726_v27 }
 0x20b   :  { %v729_v31 = vpop.f32.mrb[2].mxu1  ;;  %v1147_v54 = vadd.f32 %v728_v30, %v1144_v29 }
 0x20c   :  { %v730_v32 = vpop.f32.mrb[3].mxu1 }
 0x20d   :  { %v731_v55 = vadd.f32 %v730_v32, %v729_v31  ;;  %499 = vmax.xlane.f32.xlu0 %v1147_v54 }
 0x20f   :  { %v732_v33 = vpop.f32.mrb[4].mxu1  ;;  %v1151_v34 = vadd.f32 %v731_v55, %v1144_v29 }
 0x210   :  { %v733_v35 = vpop.f32.mrb[5].mxu1 }
 0x211   :  { %v734_v36 = vadd.f32 %v733_v35, %v732_v33  ;;  %501 = vmax.xlane.f32.xlu0 %v1151_v34 }
 0x213   :  { %v735_v37 = vpop.f32.mrb[6].mxu1  ;;  %v1155_v38 = vadd.f32 %v734_v36, %v1144_v29 }
 0x214   :  { %v736_v39 = vpop.f32.mrb[7].mxu1 }
 0x215   :  { %v737_v40 = vadd.f32 %v736_v39, %v735_v37  ;;  %503 = vmax.xlane.f32.xlu1 %v1155_v38 }
 0x217   :  { %v738_v41 = vpop.f32.mrb[8].mxu1  ;;  %v1159_v42 = vadd.f32 %v737_v40, %v1144_v29 }
 0x218   :  { %v739_v43 = vpop.f32.mrb[9].mxu1 }
 0x219   :  { %v740_v44 = vadd.f32 %v739_v43, %v738_v41  ;;  %505 = vmax.xlane.f32.xlu1 %v1159_v42 }
 0x21b   :  { %v741_v45 = vpop.f32.mrb[10].mxu1  ;;  %v1163_v46 = vadd.f32 %v740_v44, %v1144_v29 }
 0x21c   :  { %v742_v47 = vpop.f32.mrb[11].mxu1 }
 0x21d   :  { %v743_v48 = vadd.f32 %v742_v47, %v741_v45  ;;  %507 = vmax.xlane.f32.xlu0 %v1163_v46 }
 0x21f   :  { %v744_v49 = vpop.f32.mrb[12].mxu1  ;;  %v1167_v50 = vadd.f32 %v743_v48, %v1144_v29 }
 0x220   :  { %v745_v51 = vpop.f32.mrb[13].mxu1 }
 0x221   :  { %v746_v52 = vadd.f32 %v745_v51, %v744_v49  ;;  %509 = vmax.xlane.f32.xlu1 %v1167_v50 }
 0x223   :  { %v747_v0 = vpop.f32.mrb[14].mxu1  ;;  %v1171_v53 = vadd.f32 %v746_v52, %v1144_v29 }
 0x224   :  { %v748_v56 = vpop.f32.mrb[15].mxu1 }
 0x225   :  { %v749_v57 = vadd.f32 %v748_v56, %v747_v0  ;;  %511 = vmax.xlane.f32.xlu0 %v1171_v53 }
 0x227   :  { %v750_v58 = vpop.f32.mrb[16].mxu1  ;;  %v1175_v59 = vadd.f32 %v749_v57, %v1144_v29 }
 0x228   :  { %v751_v60 = vpop.f32.mrb[17].mxu1 }
 0x229   :  { %v752_v61 = vadd.f32 %v751_v60, %v750_v58  ;;  %513 = vmax.xlane.f32.xlu1 %v1175_v59 }
 0x22b   :  { %v753_v62 = vpop.f32.mrb[18].mxu1  ;;  %v1179_v63 = vadd.f32 %v752_v61, %v1144_v29 }
 0x22c   :  { %v754_v1 = vpop.f32.mrb[19].mxu1 }
 0x22d   :  { %v755_v2 = vadd.f32 %v754_v1, %v753_v62  ;;  %515 = vmax.xlane.f32.xlu0 %v1179_v63 }
 0x22f   :  { %v756_v3 = vpop.f32.mrb[20].mxu1  ;;  %v1183_v4 = vadd.f32 %v755_v2, %v1144_v29 }
 0x230   :  { %v757_v5 = vpop.f32.mrb[21].mxu1 }
 0x231   :  { %v758_v6 = vadd.f32 %v757_v5, %v756_v3  ;;  %517 = vmax.xlane.f32.xlu1 %v1183_v4 }
 0x233   :  { %v759_v7 = vpop.f32.mrb[22].mxu1  ;;  %v1187_v8 = vadd.f32 %v758_v6, %v1144_v29 }
 0x234   :  { %v760_v9 = vpop.f32.mrb[23].mxu1 }
 0x235   :  { %v761_v10 = vadd.f32 %v760_v9, %v759_v7  ;;  %519 = vmax.xlane.f32.xlu0 %v1187_v8 }
 0x237   :  { %v762_v11 = vpop.f32.mrb[24].mxu1  ;;  %v1191_v12 = vadd.f32 %v761_v10, %v1144_v29 }
 0x238   :  { %v763_v13 = vpop.f32.mrb[25].mxu1 }
 0x239   :  { %v764_v14 = vadd.f32 %v763_v13, %v762_v11  ;;  %521 = vmax.xlane.f32.xlu1 %v1191_v12 }
 0x23b   :  { %v765_v15 = vpop.f32.mrb[26].mxu1  ;;  %v1195_v16 = vadd.f32 %v764_v14, %v1144_v29 }
 0x23c   :  { %v766_v17 = vpop.f32.mrb[27].mxu1 }
 0x23d   :  { %v767_v18 = vadd.f32 %v766_v17, %v765_v15  ;;  %523 = vmax.xlane.f32.xlu0 %v1195_v16 }
 0x23f   :  { %v768_v19 = vpop.f32.mrb[28].mxu1  ;;  %v1199_v20 = vadd.f32 %v767_v18, %v1144_v29 }
 0x240   :  { %v769_v21 = vpop.f32.mrb[29].mxu1 }
 0x241   :  { %v770_v22 = vadd.f32 %v769_v21, %v768_v19  ;;  %525 = vmax.xlane.f32.xlu1 %v1199_v20 }
 0x243   :  { %v771_v23 = vpop.f32.mrb[30].mxu1  ;;  %v1203_v24 = vadd.f32 %v770_v22, %v1144_v29 }
 0x244   :  { %v772_v25 = vpop.f32.mrb[31].mxu1 }
 0x245   :  { %v773_v26 = vadd.f32 %v772_v25, %v771_v23  ;;  %527 = vmax.xlane.f32.xlu0 %v1203_v24 }
 0x247   :  { %v1207_v27 = vadd.f32 %v773_v26, %v1144_v29 }
 0x249   :  { %529 = vmax.xlane.f32.xlu1 %v1207_v27 }
 0x29a   :  { %v500_v28 = vpop.xlane.xlu0 %499 }
 0x29b   :  { %v1211_v30 = vsub.f32 %v1147_v54, %v500_v28 }
 0x29d   :  { %v547_v31 = vmul.f32 1.442695, %v1211_v30 }
 0x29e   :  { %v502_v32 = vpop.xlane.xlu0 %501 }
 0x29f   :  { %847 = vpow2.f32 %v547_v31  ;;  %v1215_v55 = vsub.f32 %v1151_v34, %v502_v32 }
 0x2a1   :  { %v549_v33 = vmul.f32 1.442695, %v1215_v55 }
 0x2a2   :  { %v504_v35 = vpop.xlane.xlu1 %503 }
 0x2a3   :  { %849 = vpow2.f32 %v549_v33  ;;  %v1219_v29 = vsub.f32 %v1155_v38, %v504_v35 }
 0x2a5   :  { %v551_v36 = vmul.f32 1.442695, %v1219_v29 }
 0x2a6   :  { %v506_v37 = vpop.xlane.xlu1 %505 }
 0x2a7   :  { %851 = vpow2.f32 %v551_v36  ;;  %v1223_v54 = vsub.f32 %v1159_v42, %v506_v37 }
 0x2a9   :  { %v848_v39 = vpop.eup %847  ;;  %v553_v40 = vmul.f32 1.442695, %v1223_v54 }
 0x2aa   :  { %579 = vadd.xlane.f32.xlu0 %v848_v39  ;;  %v508_v34 = vpop.xlane.xlu0 %507 }
 0x2ab   :  { %853 = vpow2.f32 %v553_v40  ;;  %v1227_v41 = vsub.f32 %v1163_v46, %v508_v34 }
 0x2ad   :  { %v850_v43 = vpop.eup %849  ;;  %v555_v38 = vmul.f32 1.442695, %v1227_v41 }
 0x2ae   :  { %v510_v44 = vpop.xlane.xlu1 %509  ;;  %581 = vadd.xlane.f32.xlu1 %v850_v43 }
 0x2af   :  { %855 = vpow2.f32 %v555_v38  ;;  %v1231_v45 = vsub.f32 %v1167_v50, %v510_v44 }
 0x2b1   :  { %v852_v42 = vpop.eup %851  ;;  %v557_v47 = vmul.f32 1.442695, %v1231_v45 }
 0x2b2   :  { %583 = vadd.xlane.f32.xlu0 %v852_v42  ;;  %v512_v48 = vpop.xlane.xlu0 %511 }
 0x2b3   :  { %857 = vpow2.f32 %v557_v47  ;;  %v1235_v49 = vsub.f32 %v1171_v53, %v512_v48 }
 0x2b5   :  { %v854_v46 = vpop.eup %853  ;;  %v559_v51 = vmul.f32 1.442695, %v1235_v49 }
 0x2b6   :  { %v514_v52 = vpop.xlane.xlu1 %513  ;;  %585 = vadd.xlane.f32.xlu1 %v854_v46 }
 0x2b7   :  { %859 = vpow2.f32 %v559_v51  ;;  %v1239_v0 = vsub.f32 %v1175_v59, %v514_v52 }
 0x2b9   :  { %v856_v50 = vpop.eup %855  ;;  %v561_v56 = vmul.f32 1.442695, %v1239_v0 }
 0x2ba   :  { %587 = vadd.xlane.f32.xlu0 %v856_v50  ;;  %v516_v57 = vpop.xlane.xlu0 %515 }
 0x2bb   :  { %861 = vpow2.f32 %v561_v56  ;;  %v1243_v58 = vsub.f32 %v1179_v63, %v516_v57 }
 0x2bd   :  { %v858_v53 = vpop.eup %857  ;;  %v563_v60 = vmul.f32 1.442695, %v1243_v58 }
 0x2be   :  { %v518_v61 = vpop.xlane.xlu1 %517  ;;  %589 = vadd.xlane.f32.xlu1 %v858_v53 }
 0x2bf   :  { %863 = vpow2.f32 %v563_v60  ;;  %v1247_v62 = vsub.f32 %v1183_v4, %v518_v61 }
 0x2c1   :  { %v860_v59 = vpop.eup %859  ;;  %v565_v1 = vmul.f32 1.442695, %v1247_v62 }
 0x2c2   :  { %591 = vadd.xlane.f32.xlu0 %v860_v59  ;;  %v520_v2 = vpop.xlane.xlu0 %519 }
 0x2c3   :  { %865 = vpow2.f32 %v565_v1  ;;  %v1251_v3 = vsub.f32 %v1187_v8, %v520_v2 }
 0x2c5   :  { %v862_v63 = vpop.eup %861  ;;  %v567_v5 = vmul.f32 1.442695, %v1251_v3 }
 0x2c6   :  { %v522_v6 = vpop.xlane.xlu1 %521  ;;  %593 = vadd.xlane.f32.xlu1 %v862_v63 }
 0x2c7   :  { %867 = vpow2.f32 %v567_v5  ;;  %v1255_v7 = vsub.f32 %v1191_v12, %v522_v6 }
 0x2c9   :  { %v864_v4 = vpop.eup %863  ;;  %v569_v9 = vmul.f32 1.442695, %v1255_v7 }
 0x2ca   :  { %595 = vadd.xlane.f32.xlu0 %v864_v4  ;;  %v524_v10 = vpop.xlane.xlu0 %523 }
 0x2cb   :  { %869 = vpow2.f32 %v569_v9  ;;  %v1259_v11 = vsub.f32 %v1195_v16, %v524_v10 }
 0x2cd   :  { %v866_v8 = vpop.eup %865  ;;  %v571_v13 = vmul.f32 1.442695, %v1259_v11 }
 0x2ce   :  { %v526_v14 = vpop.xlane.xlu1 %525  ;;  %597 = vadd.xlane.f32.xlu1 %v866_v8 }
 0x2cf   :  { %871 = vpow2.f32 %v571_v13  ;;  %v1263_v15 = vsub.f32 %v1199_v20, %v526_v14 }
 0x2d1   :  { %v868_v12 = vpop.eup %867  ;;  %v573_v17 = vmul.f32 1.442695, %v1263_v15 }
 0x2d2   :  { %599 = vadd.xlane.f32.xlu0 %v868_v12  ;;  %v528_v18 = vpop.xlane.xlu0 %527 }
 0x2d3   :  { %873 = vpow2.f32 %v573_v17  ;;  %v1267_v19 = vsub.f32 %v1203_v24, %v528_v18 }
 0x2d5   :  { %v870_v16 = vpop.eup %869  ;;  %v575_v21 = vmul.f32 1.442695, %v1267_v19 }
 0x2d6   :  { %v530_v22 = vpop.xlane.xlu1 %529  ;;  %601 = vadd.xlane.f32.xlu1 %v870_v16 }
 0x2d7   :  { %875 = vpow2.f32 %v575_v21  ;;  %v1271_v23 = vsub.f32 %v1207_v27, %v530_v22 }
 0x2d9   :  { %v872_v20 = vpop.eup %871  ;;  %v577_v25 = vmul.f32 1.442695, %v1271_v23 }
 0x2da   :  { %603 = vadd.xlane.f32.xlu0 %v872_v20 }
 0x2db   :  { %877 = vpow2.f32 %v577_v25 }
 0x2dd   :  { %v874_v26 = vpop.eup %873 }
 0x2de   :  { %605 = vadd.xlane.f32.xlu1 %v874_v26 }
 0x2e1   :  { %v876_v28 = vpop.eup %875 }
 0x2e2   :  { %607 = vadd.xlane.f32.xlu0 %v876_v28 }
 0x2e5   :  { %v878_v24 = vpop.eup %877 }
 0x2e6   :  { %609 = vadd.xlane.f32.xlu1 %v878_v24 }
 0x337   :  { %v580_v31 = vpop.xlane.xlu0 %579 }
 0x338   :  { %879 = vlog2.f32 %v580_v31 }
 0x33b   :  { %v582_v32 = vpop.xlane.xlu1 %581 }
 0x33c   :  { %881 = vlog2.f32 %v582_v32 }
 0x33f   :  { %v584_v33 = vpop.xlane.xlu0 %583 }
 0x340   :  { %883 = vlog2.f32 %v584_v33 }
 0x342   :  { %v880_v35 = vpop.eup %879 }
 0x343   :  { %v612_v27 = vmul.f32 0.6931472, %v880_v35  ;;  %v586_v36 = vpop.xlane.xlu1 %585 }
 0x344   :  { %885 = vlog2.f32 %v586_v36 }
 0x345   :  { %v643_v37 = vsub.f32 %v1211_v30, %v612_v27 }
 0x346   :  { %v882_v39 = vpop.eup %881 }
 0x347   :  { %659 = vst [vmem:[#allocation8] sm:$0xff] %v643_v37  ;;  %v614_v40 = vmul.f32 0.6931472, %v882_v39  ;;  %v588_v34 = vpop.xlane.xlu0 %587 }
 0x348   :  { %887 = vlog2.f32 %v588_v34 }
 0x349   :  { %v644_v43 = vsub.f32 %v1215_v55, %v614_v40 }
 0x34a   :  { %v884_v38 = vpop.eup %883 }
 0x34b   :  { %660 = vst [vmem:[#allocation8 + $0x8] sm:$0xff] %v644_v43  ;;  %v616_v44 = vmul.f32 0.6931472, %v884_v38  ;;  %v590_v42 = vpop.xlane.xlu1 %589 }
 0x34c   :  { %889 = vlog2.f32 %v590_v42 }
 0x34d   :  { %v645_v47 = vsub.f32 %v1219_v29, %v616_v44 }
 0x34e   :  { %v886_v48 = vpop.eup %885 }
 0x34f   :  { %661 = vst [vmem:[#allocation8 + $0x10] sm:$0xff] %v645_v47  ;;  %v618_v46 = vmul.f32 0.6931472, %v886_v48  ;;  %v592_v51 = vpop.xlane.xlu0 %591 }
 0x350   :  { %891 = vlog2.f32 %v592_v51 }
 0x351   :  { %v646_v30 = vsub.f32 %v1223_v54, %v618_v46 }
 0x352   :  { %v888_v52 = vpop.eup %887 }
 0x353   :  { %662 = vst [vmem:[#allocation8 + $0x18] sm:$0xff] %v646_v30  ;;  %v620_v50 = vmul.f32 0.6931472, %v888_v52  ;;  %v594_v56 = vpop.xlane.xlu1 %593 }
 0x354   :  { %893 = vlog2.f32 %v594_v56 }
 0x355   :  { %v647_v55 = vsub.f32 %v1227_v41, %v620_v50 }
 0x356   :  { %v890_v57 = vpop.eup %889 }
 0x357   :  { %663 = vst [vmem:[#allocation8 + $0x20] sm:$0xff] %v647_v55  ;;  %v622_v53 = vmul.f32 0.6931472, %v890_v57  ;;  %v596_v60 = vpop.xlane.xlu0 %595 }
 0x358   :  { %895 = vlog2.f32 %v596_v60 }
 0x359   :  { %v648_v29 = vsub.f32 %v1231_v45, %v622_v53 }
 0x35a   :  { %v892_v61 = vpop.eup %891 }
 0x35b   :  { %664 = vst [vmem:[#allocation8 + $0x28] sm:$0xff] %v648_v29  ;;  %v624_v59 = vmul.f32 0.6931472, %v892_v61  ;;  %v598_v1 = vpop.xlane.xlu1 %597 }
 0x35c   :  { %897 = vlog2.f32 %v598_v1 }
 0x35d   :  { %v649_v54 = vsub.f32 %v1235_v49, %v624_v59 }
 0x35e   :  { %v894_v2 = vpop.eup %893 }
 0x35f   :  { %665 = vst [vmem:[#allocation8 + $0x30] sm:$0xff] %v649_v54  ;;  %v626_v63 = vmul.f32 0.6931472, %v894_v2  ;;  %v600_v5 = vpop.xlane.xlu0 %599 }
 0x360   :  { %899 = vlog2.f32 %v600_v5 }
 0x361   :  { %v650_v41 = vsub.f32 %v1239_v0, %v626_v63 }
 0x362   :  { %v896_v6 = vpop.eup %895 }
 0x363   :  { %666 = vst [vmem:[#allocation8 + $0x38] sm:$0xff] %v650_v41  ;;  %v628_v4 = vmul.f32 0.6931472, %v896_v6  ;;  %v602_v9 = vpop.xlane.xlu1 %601 }
 0x364   :  { %901 = vlog2.f32 %v602_v9 }
 0x365   :  { %v651_v45 = vsub.f32 %v1243_v58, %v628_v4 }
 0x366   :  { %v898_v10 = vpop.eup %897 }
 0x367   :  { %667 = vst [vmem:[#allocation8 + $0x40] sm:$0xff] %v651_v45  ;;  %v630_v8 = vmul.f32 0.6931472, %v898_v10  ;;  %v604_v13 = vpop.xlane.xlu0 %603 }
 0x368   :  { %903 = vlog2.f32 %v604_v13 }
 0x369   :  { %v652_v49 = vsub.f32 %v1247_v62, %v630_v8 }
 0x36a   :  { %v900_v14 = vpop.eup %899 }
 0x36b   :  { %668 = vst [vmem:[#allocation8 + $0x48] sm:$0xff] %v652_v49  ;;  %v632_v12 = vmul.f32 0.6931472, %v900_v14  ;;  %v606_v17 = vpop.xlane.xlu1 %605 }
 0x36c   :  { %905 = vlog2.f32 %v606_v17 }
 0x36d   :  { %v653_v0 = vsub.f32 %v1251_v3, %v632_v12 }
 0x36e   :  { %v902_v18 = vpop.eup %901 }
 0x36f   :  { %669 = vst [vmem:[#allocation8 + $0x50] sm:$0xff] %v653_v0  ;;  %v634_v16 = vmul.f32 0.6931472, %v902_v18  ;;  %v608_v21 = vpop.xlane.xlu0 %607 }
 0x370   :  { %907 = vlog2.f32 %v608_v21 }
 0x371   :  { %v654_v58 = vsub.f32 %v1255_v7, %v634_v16 }
 0x372   :  { %v904_v22 = vpop.eup %903 }
 0x373   :  { %670 = vst [vmem:[#allocation8 + $0x58] sm:$0xff] %v654_v58  ;;  %v636_v20 = vmul.f32 0.6931472, %v904_v22  ;;  %v610_v25 = vpop.xlane.xlu1 %609 }
 0x374   :  { %909 = vlog2.f32 %v610_v25 }
 0x375   :  { %v655_v62 = vsub.f32 %v1259_v11, %v636_v20 }
 0x376   :  { %v906_v26 = vpop.eup %905 }
 0x377   :  { %671 = vst [vmem:[#allocation8 + $0x60] sm:$0xff] %v655_v62  ;;  %v638_v28 = vmul.f32 0.6931472, %v906_v26 }
 0x379   :  { %v656_v24 = vsub.f32 %v1263_v15, %v638_v28 }
 0x37a   :  { %v908_v3 = vpop.eup %907 }
 0x37b   :  { %672 = vst [vmem:[#allocation8 + $0x68] sm:$0xff] %v656_v24  ;;  %v640_v31 = vmul.f32 0.6931472, %v908_v3 }
 0x37d   :  { %v657_v32 = vsub.f32 %v1267_v19, %v640_v31 }
 0x37e   :  { %v910_v33 = vpop.eup %909 }
 0x37f   :  { %673 = vst [vmem:[#allocation8 + $0x70] sm:$0xff] %v657_v32  ;;  %v642_v7 = vmul.f32 0.6931472, %v910_v33 }
 0x381   :  { %v658_v35 = vsub.f32 %v1271_v23, %v642_v7 }
 0x383   :  { %674 = vst [vmem:[#allocation8 + $0x78] sm:$0xff] %v658_v35 }
 0x384   :  { %988 = shalt.err (!%p985_p0)
}
 0x385   :  { %s989_s12 = scalar_lea.hbm %s1310_s5, 2048 }
 0x386   :  { %p990_p1 = scmp.ne.s32.totalorder %s1310_s5, %s989_s12  ;;  %p993_p2 = scmp.lt.u32.totalorder %s989_s12, %s1310_s5 }
 0x388   :  { %p995_p3 = pnand %p993_p2, %p990_p1 }
 0x38a   :  { %998 = shalt.err (!%p995_p3)
}
 0x38b   :  { %686 = dma.vmem_to_hbm [thread:$0]  %s681_s8, 2048, %s1310_s5, [#allocation4], %s1009_s1, %s1009_s1, %s1010_s17  }
 0x38c   :  { %1003 = dma.done.wait [#allocation4], 2048  }
 0x38d   :  { %1004 = vsyncadd [#allocation4], 4294965248 }
 0x38e   :  { %690 = vsyncpa [#allocation3], 1 }
 0x38f   :  { %691 = vsyncpa [#allocation6], 1 }
 0x390   :  { %692 = vsyncpa [#allocation4], 1 }

</bundles_post_ra>
